<compile_context>
chip_gen: v7x
topology: tpu7x:2x2x1
jax: 0.10.0
libtpu: 0.0.40
codegen_flags: <defaults>
</compile_context>

<pallas_src>
import functools

import jax
import jax.numpy as jnp
from jax.experimental import pallas as pl
from jax.experimental.pallas import tpu as pltpu

# ----------------------------- small config ---------------------------------
LATENT = 32            # config.latent_size
WINDOW = (2, 4, 4)     # config.window_size
N_PR_VARS = 4          # mesh.n_pr_vars
N_SFC_VARS = 5         # mesh.n_sfc_vars
NC = 4                 # number of constant vars (get_constant_vars)
CONV_DIMS = [LATENT, 512, 192, 96]   # EarthConvDecoder2d conv_dims
D_LAT = 3              # latent depth: D_LAT-1 pressure slabs + 1 surface slab
H_LAT, W_LAT = 4, 8    # latent spatial grid (inner, before window padding)
WPAD = WINDOW[2] // 2

Z_PR = D_LAT - 1                     # pressure slabs
PR_CH = N_PR_VARS * 4 * Z_PR         # 32 flattened pressure channels
OUT_CH = PR_CH + N_SFC_VARS          # 37 channels of the concatenated output
H_FULL, W_FULL = 8 * H_LAT, 8 * W_LAT
CELLS = H_LAT * W_LAT                # 32 coarse cells per latent image (rows / step)
K_IN = D_LAT * LATENT                # 96 fused input channels per cell
N_OUT = 8 * 8 * OUT_CH               # 2368 fused output lanes per cell


# ----------------------------- the fused kernel ------------------------------
def _decoder_kernel(x_ref, w_ref, cadd_ref, out_ref):
    # One MXU dot (bf16 x bf16 -> f32 accumulate), f32 bias/const-skip epilogue,
    # one lane-dense unmasked store.  No in-kernel pixel-shuffle work remains.
    out_ref[...] = (
        jnp.dot(x_ref[...].astype(jnp.bfloat16), w_ref[...],
                preferred_element_type=jnp.float32)
        + cadd_ref[...]
    ).astype(out_ref.dtype)


# ----------------------------- parameters -----------------------------------
def init_params(key):
    keys = jax.random.split(key, 11)
    sc = 0.02
    hi = jax.lax.Precision.HIGHEST
    raw = {}
    # torch-layout weights (kept for the pure-JAX reference check)
    raw["pr_w"] = sc * jax.random.normal(keys[0], (LATENT, N_PR_VARS, 4, 8, 8), jnp.float32)
    raw["pr_b"] = sc * jax.random.normal(keys[1], (N_PR_VARS,), jnp.float32)
    for i in range(3):
        cin, cout = CONV_DIMS[i], CONV_DIMS[i + 1]
        raw[f"up{i}_w"] = sc * jax.random.normal(keys[2 + 2 * i], (cin, cout, 2, 2), jnp.float32)
        raw[f"up{i}_b"] = sc * jax.random.normal(keys[3 + 2 * i], (cout,), jnp.float32)
    raw["const_data"] = sc * jax.random.normal(keys[8], (1, NC, H_FULL + 1, W_FULL), jnp.float32)
    raw["out_w"] = sc * jax.random.normal(keys[9], (CONV_DIMS[-1] + NC, N_SFC_VARS), jnp.float32)
    raw["out_b"] = sc * jax.random.normal(keys[10], (N_SFC_VARS,), jnp.float32)

    # ---- fused weight: (K_IN=96, dh=8, dw=8, ch=37) -> (96, 2368) -----------
    w = jnp.zeros((K_IN, 8, 8, OUT_CH), jnp.float32)

    # pressure ConvTranspose3d(k=s=(4,8,8)); block-diagonal over the z slab.
    # output channel = co*8 + 4*z + dd (matches the module's permute + flatten).
    pr_w_t = jnp.transpose(raw["pr_w"], (0, 3, 4, 1, 2))      # (ci, dh, dw, co, dd)
    w_pr = jnp.zeros((K_IN, 8, 8, N_PR_VARS, Z_PR, 4), jnp.float32)
    for z in range(Z_PR):
        w_pr = w_pr.at[z * LATENT:(z + 1) * LATENT, :, :, :, z, :].set(pr_w_t)
    w = w.at[:, :, :, :PR_CH].set(w_pr.reshape(K_IN, 8, 8, PR_CH))

    # surface chain (up0 -> up1 -> up2 -> 1x1 out conv), all linear under the
    # current approximation, composed into one (32 -> 8*8*5) map at init time.
    # TODO(synk): this full-chain fusion is only valid while EarthConvDecoder2d's
    # norm/activation/pole convs remain approximated as plain linear transposed convs.
    w0, w1, w2 = raw["up0_w"], raw["up1_w"], raw["up2_w"]
    out_w_feat = raw["out_w"][:CONV_DIMS[-1]]                  # (96, 5)
    out_w_const = raw["out_w"][CONV_DIMS[-1]:]                 # (NC, 5)
    w_sfc = jnp.einsum("iapq,abrs,bctu,cv->iprtqsuv", w0, w1, w2, out_w_feat,
                       precision=hi).reshape(LATENT, 8, 8, N_SFC_VARS)
    w = w.at[Z_PR * LATENT:, :, :, PR_CH:].set(w_sfc)

    # ---- input-independent additive term (conv biases + const-var skip) -----
    pr_add = jnp.repeat(raw["pr_b"], 4 * Z_PR)                 # (32,) per-channel
    b0, b1, b2 = raw["up0_b"], raw["up1_b"], raw["up2_b"]
    bias1 = jnp.einsum("abrs,a->brs", w1, b0, precision=hi) + b1[:, None, None]
    bias2 = (jnp.einsum("bctu,brs->crtsu", w2, bias1, precision=hi)
             + b2[:, None, None, None, None]).reshape(CONV_DIMS[-1], 4, 4)
    bias2_88 = jnp.tile(bias2, (1, 2, 2))                      # (96, 8, 8) over (dh, dw)
    sfc_tap_add = jnp.einsum("cv,chw->hwv", out_w_feat, bias2_88, precision=hi)  # (8,8,5)
    const = raw["const_data"][0, :, :H_FULL, :]                # (NC, 32, 64)
    sfc_pos_add = (jnp.einsum("kv,khw->hwv", out_w_const, const, precision=hi)
                   + raw["out_b"])                             # (32, 64, 5)
    sfc_pos_add = jnp.transpose(
        sfc_pos_add.reshape(H_LAT, 8, W_LAT, 8, N_SFC_VARS), (0, 2, 1, 3, 4))
    sfc_add = sfc_pos_add + sfc_tap_add[None, None]            # (4, 8, 8, 8, 5)

    cadd = jnp.concatenate(
        [jnp.broadcast_to(pr_add, (H_LAT, W_LAT, 8, 8, PR_CH)), sfc_add],
        axis=-1).reshape(CELLS, N_OUT)

    params = {
        "w_fused": w.reshape(K_IN, N_OUT).astype(jnp.bfloat16),   # (96, 2368)
        "const_add": cadd.astype(jnp.float32),                    # (32, 2368)
    }
    return params, raw


# ------------------------------ forward pass ---------------------------------
def res_conv_decoder_forward(x, params):
    """x: (B, D, H, Wpad, latent) channels-last latent cube."""
    # x = self.tr(x)
    # TODO(synk): SlideLayers3D windowed transformer is not open-sourced; identity here.
    B_, D_, Hc, Wp, C = x.shape
    assert (D_, Hc, Wp - 2 * WPAD, C) == (D_LAT, H_LAT, W_LAT, LATENT)
    x = x[:, :, :, WPAD:-WPAD, :]                              # drop window pad

    # rows = (b, h0, w0) coarse cells; cols = [pr z0 | pr z1 | sfc] latent channels
    x_rows = jnp.transpose(x, (0, 2, 3, 1, 4)).reshape(B_ * CELLS, K_IN)

    grid = (B_,)      # 32 rows / step; >= 2 steps so both v7x TensorCores get work
    out_flat = pl.pallas_call(
        _decoder_kernel,
        grid=grid,
        in_specs=[
            pl.BlockSpec((CELLS, K_IN), lambda i: (i, 0)),
            pl.BlockSpec((K_IN, N_OUT), lambda i: (0, 0)),     # resident fused weight
            pl.BlockSpec((CELLS, N_OUT), lambda i: (0, 0)),    # resident bias/const term
        ],
        out_specs=pl.BlockSpec((CELLS, N_OUT), lambda i: (i, 0)),
        out_shape=jax.ShapeDtypeStruct((B_ * CELLS, N_OUT), jnp.float32),
        compiler_params=pltpu.CompilerParams(
            dimension_semantics=("parallel",)),
    )(x_rows, params["w_fused"], params["const_add"])

    # tap-major -> full-resolution de-interleave: one tiny XLA transpose (~1 MiB)
    y = out_flat.reshape(B_, H_LAT, W_LAT, 8, 8, OUT_CH)
    y = jnp.transpose(y, (0, 1, 3, 2, 4, 5)).reshape(B_, H_FULL, W_FULL, OUT_CH)
    return y


# -------------------------- pure-JAX reference --------------------------------
def reference_forward(x, raw):
    hi = jax.lax.Precision.HIGHEST
    x = x[:, :, :, WPAD:-WPAD, :]
    B_ = x.shape[0]
    # pressure branch: ConvTranspose3d(k=s=(4,8,8)) + permute + flatten
    xp = x[:, :-1]                                             # (B, Z, H, W, C)
    y = jnp.einsum("bzhwc,cokmn->bzhwokmn", xp, raw["pr_w"], precision=hi)
    y = y + raw["pr_b"][None, None, None, None, :, None, None, None]
    _, Z, H, W = y.shape[:4]
    y = jnp.transpose(y, (0, 4, 1, 5, 2, 6, 3, 7)).reshape(B_, N_PR_VARS, 4 * Z, 8 * H, 8 * W)
    pr = jnp.transpose(y, (0, 3, 4, 1, 2)).reshape(B_, 8 * H, 8 * W, N_PR_VARS * 4 * Z)
    # surface branch: 3 stride-2 transposed convs + const skip + 1x1 conv
    h = x[:, -1]
    for i in range(3):
        w, b = raw[f"up{i}_w"], raw[f"up{i}_b"]
        cout = w.shape[1]
        y = jnp.einsum("bhwc,cokl->bhwokl", h, w, precision=hi)
        y = y + b[None, None, None, :, None, None]
        Bh, Hh, Wh = y.shape[:3]
        h = jnp.transpose(y, (0, 1, 4, 2, 5, 3)).reshape(Bh, 2 * Hh, 2 * Wh, cout)
    Hout, Wout = h.shape[1], h.shape[2]
    skip = jnp.transpose(raw["const_data"][:, :, :Hout, :], (0, 2, 3, 1))
    skip = jnp.broadcast_to(skip, (B_, Hout, Wout, NC))
    hc = jnp.concatenate([h, skip], axis=-1)
    sfc = jnp.einsum("bhwc,cd->bhwd", hc, raw["out_w"], precision=hi) + raw["out_b"]
    return jnp.concatenate([pr, sfc], axis=-1)


# ---------------------------------- main -------------------------------------
if __name__ == "__main__":
    key = jax.random.PRNGKey(0)
    pkey, xkey = jax.random.split(key)
    params, raw = init_params(pkey)

    B = 2
    x = jax.random.normal(
        xkey, (B, D_LAT, H_LAT, W_LAT + 2 * WPAD, LATENT), jnp.float32)

    fwd = jax.jit(functools.partial(res_conv_decoder_forward, params=params))
    y = jax.block_until_ready(fwd(x))

    assert y.shape == (B, H_FULL, W_FULL, OUT_CH), y.shape
    assert bool(jnp.all(jnp.isfinite(y)))

    y_ref = reference_forward(x, raw)
    err = float(jnp.max(jnp.abs(y - y_ref)))
    assert err < 2e-2, f"max abs err vs reference: {err}"
    print("KERNEL_OK")
</pallas_src>

<mosaic_0001>
module attributes {stable_mosaic.version = 11 : i64} {
  func.func @_decoder_kernel(%arg0: i32, %arg1: memref<32x96xf32, #tpu.memory_space<vmem>>, %arg2: memref<96x2368xbf16, #tpu.memory_space<vmem>>, %arg3: memref<32x2368xf32, #tpu.memory_space<vmem>>, %arg4: memref<32x2368xf32, #tpu.memory_space<vmem>>) attributes {dimension_semantics = [#tpu.dimension_semantics<parallel>], iteration_bounds = array<i64: 2>, scalar_prefetch = 0 : i64, scratch_operands = 0 : i64, tpu.core_type = #tpu.core_type<tc>, window_params = [{transform_indices = @transform_0, window_bounds = array<i64: 32, 96>}, {pipeline_mode = #tpu.pipeline_mode<synchronous>, transform_indices = @transform_1, window_bounds = array<i64: 96, 2368>}, {pipeline_mode = #tpu.pipeline_mode<synchronous>, transform_indices = @transform_2, window_bounds = array<i64: 32, 2368>}, {transform_indices = @transform_3, window_bounds = array<i64: 32, 2368>}]} {
    %c0 = arith.constant 0 : index
    %c0_0 = arith.constant 0 : index
    %0 = vector.load %arg1[%c0, %c0_0] : memref<32x96xf32, #tpu.memory_space<vmem>>, vector<32x96xf32>
    %1 = arith.truncf %0 : vector<32x96xf32> to vector<32x96xbf16>
    %c0_1 = arith.constant 0 : index
    %c0_2 = arith.constant 0 : index
    %2 = vector.load %arg2[%c0_1, %c0_2] : memref<96x2368xbf16, #tpu.memory_space<vmem>>, vector<96x2368xbf16>
    %cst = arith.constant dense<0.000000e+00> : vector<32x2368xf32>
    %3 = tpu.matmul %1, %2, %cst {dimension_numbers = #tpu.dot_dimension_numbers<[1], [0], [0], [1], [0, 0, 1, 1], [], []>} : vector<32x96xbf16>, vector<96x2368xbf16>, vector<32x2368xf32> -> vector<32x2368xf32>
    %c0_3 = arith.constant 0 : index
    %c0_4 = arith.constant 0 : index
    %4 = vector.load %arg3[%c0_3, %c0_4] : memref<32x2368xf32, #tpu.memory_space<vmem>>, vector<32x2368xf32>
    %5 = arith.addf %3, %4 : vector<32x2368xf32>
    %c0_5 = arith.constant 0 : index
    %c0_6 = arith.constant 0 : index
    %6 = vector.load %arg4[%c0_5, %c0_6] : memref<32x2368xf32, #tpu.memory_space<vmem>>, vector<32x2368xf32>
    tpu.vector_store %arg4[%c0_5, %c0_6], %5 {strides = array<i32>} : memref<32x2368xf32, #tpu.memory_space<vmem>>, vector<32x2368xf32>,
    return
  }
  func.func @transform_0(%arg0: i32) -> (i32, i32) {
    %c0_i32 = arith.constant 0 : i32
    %c0_i32_0 = arith.constant 0 : i32
    return %arg0, %c0_i32 : i32, i32
  }
  func.func @transform_1(%arg0: i32) -> (i32, i32) {
    %c0_i32 = arith.constant 0 : i32
    %c0_i32_0 = arith.constant 0 : i32
    %c0_i32_1 = arith.constant 0 : i32
    return %c0_i32, %c0_i32_0 : i32, i32
  }
  func.func @transform_2(%arg0: i32) -> (i32, i32) {
    %c0_i32 = arith.constant 0 : i32
    %c0_i32_0 = arith.constant 0 : i32
    %c0_i32_1 = arith.constant 0 : i32
    return %c0_i32, %c0_i32_0 : i32, i32
  }
  func.func @transform_3(%arg0: i32) -> (i32, i32) {
    %c0_i32 = arith.constant 0 : i32
    %c0_i32_0 = arith.constant 0 : i32
    return %arg0, %c0_i32 : i32, i32
  }
}

</mosaic_0001>

<bundles_post_ra>
// kernel: res_conv_decoder_forward.1
= control target key start
LH: loop header
LB: loop body
LE: loop exit
PB: predicated region body
PF: predicated region fallthrough
CT: control target
= control target key end

     0   :  { %8 = vsyncpa [#allocation3], 0  ;;  %s2076_s12 = smov 0   ;;  %s2631_s0 = inlined_call_operand.vmem [shape: f32[64,96], index: 0, kind: input, shape index: {}]   ;;  %s2632_s1 = inlined_call_operand.vmem [shape: bf16[96,2368], index: 1, kind: input, shape index: {}]   ;;  %s2633_s2 = inlined_call_operand.hbm [shape: f32[32,2368], index: 2, kind: input, shape index: {}]   ;;  %s2634_s3 = inlined_call_operand.vmem [shape: f32[64,2368], index: 3, kind: output, shape index: {}]  }
   0x1 LB: > { %s1650_s13 = sadd.s32 4294967295, %s2050_s12   ;;  %p1652_p0 = scmp.ge.s32.totalorder %s2050_s12, 1  ;;  %s2050_s12 = sphi %s2076_s12, %s14_s12  }
   0x2   : > { %p113_p1 = scmp.lt.s32.totalorder %s2050_s12, 3  ;;  %s2052_s14 = smov [#allocation2]  }
   0x3   : > { %s128_s15 = sshll.u32 %s2052_s14, 4  ;;  %p2090_p3 = scmp.eq.s32.totalorder %s1650_s13, 0  ;;  %s129_s15 = int_to_ptr.vmem [resolvable:$true] %s128_s15 }
   0x4   : > { %p2084_p2 = pnand %p1652_p0, %p113_p1  ;;  %s2012_s21 = scalar_lea.hbm %s2633_s2, 9728 }
   0x5   : > { %s2639_s17 = scalar_select %p2090_p3, 1, 0 }
   0x6   : > { %s2638_s16 = scalar_select %p2084_p2, 1, 0 }
   0x7   : > { %p1826_p4 = pneg %p2084_p2  ;;  %p2013_p6 = scmp.ne.s32.totalorder %s2633_s2, %s2012_s21 }
   0x8   : > { %p2019_p10 = scmp.lt.u32.totalorder %s2012_s21, %s2633_s2 }
   0x9   : > { %p2098_p5 = pnand %p2090_p3, %p1826_p4 }
   0xb   : > { %p2014_p7 = pneg %p2098_p5 }
   0xd   : > { %p2015_p8 = pnand %p2014_p7, %p2013_p6 }
   0xf   : > { %p2016_p9 = pneg %p2015_p8 }
  0x11   : > { %p2021_p11 = pnand %p2019_p10, %p2016_p9 }
  0x13   : > { %2024 = shalt.err (!%p2021_p11)
}
  0x14   : > { %s2025_s26 = scalar_lea.vmem %s129_s15, 9728  ;;  %p2033_p1 = scmp.lt.s32.totalorder %s129_s15, %s129_s15 }
  0x15   : > { %p2026_p12 = scmp.ne.s32.totalorder %s129_s15, %s2025_s26  ;;  %p2034_p4 = scmp.lt.s32.totalorder %s2025_s26, %s2025_s26 }
  0x17   : > { %p2028_p13 = pnand %p2026_p12, %p2014_p7  ;;  %p2035_p3 = por %p2034_p4, %p2033_p1 }
  0x19   : > { %p2029_p0 = pneg %p2028_p13 }
  0x1b   : > { %p2036_p2 = pnand %p2035_p3, %p2029_p0 }
  0x1d   : > { %2039 = shalt.err (!%p2036_p2)
}
  0x1e   : > { %s2053_s27 = smov 2432   ;;  %s2054_s28 = smov 152  }
  0x1f   : > { %1829 = dma.hbm_to_vmem [thread:$0]  (!%p2098_p5), %s2633_s2, 9728, %s129_s15, [#allocation3], %s2053_s27, %s2053_s27, %s2054_s28  }
  0x20   : > { %p2641_p6 = scmp.ne.s32.totalorder %s2638_s16, 0 }
  0x21   : > { %p2642_p8 = scmp.ne.s32.totalorder (!%p2641_p6), %s2639_s17, 0 }
  0x22   : > { %153 = sbr.rel (%p2641_p6) target bundleno = 390 (0x186), region = 32 }
  0x29   : > { %2045 = dma.done.wait (%p2642_p8), [#allocation3], 9728  }
  0x2a   : > { %2047 = vsyncadd (%p2642_p8), [#allocation3], 4294957568  ;;  %v2055_v0 = vmov 0   ;;  %v1844_v1 = vld [vmem:[%s2632_s1 + $0x4] ss:$76 sps:$4 sm:$0xff]   ;;  %s1657_s8 = sshll.u32 %s1650_s13, 2 }
  0x2b   : > { %1009 = vmatprep.mubr.bf16.mxu0 %v2055_v0  ;;  %1062 = vmatprep.mubr.bf16.mxu1 %v2055_v0  ;;  %v1846_v2 = vld [vmem:[%s2632_s1] ss:$76 sps:$4 sm:$0xff]   ;;  %v1849_v4 = vld [vmem:[%s2632_s1 + $0x8] ss:$76 sps:$4 sm:$0xff]   ;;  %v1852_v6 = vld [vmem:[%s2632_s1 + $0x98] ss:$76 sps:$4 sm:$0xff]  }
  0x2c   : > { %977 = vmatprep.subr.bf16.mxu0 %v1844_v1  ;;  %v1847_v3 = vld [vmem:[%s2632_s1 + $0xc] ss:$76 sps:$4 sm:$0xff]   ;;  %v1850_v5 = vld [vmem:[%s2632_s1 + $0x9c] ss:$76 sps:$4 sm:$0xff]   ;;  %v1853_v7 = vld [vmem:[%s2632_s1 + $0xa4] ss:$76 sps:$4 sm:$0xff]  }
  0x2d   : > { %978 = vmatpush1.bf16.msra.mxu0 %v1846_v2  ;;  %1030 = vmatprep.subr.bf16.mxu1 %v1847_v3  ;;  %p179_p2 = scmp.lt.s32.totalorder %s1657_s8, 7  ;;  %v1855_v8 = vld [vmem:[%s2632_s1 + $0xa0] ss:$76 sps:$4 sm:$0xff]   ;;  %v1858_v10 = vld [vmem:[%s2632_s1 + $0x130] ss:$76 sps:$4 sm:$0xff]   ;;  %vm970_vm0 = vcmask 785408  }
  0x2e   : > { %1031 = vmatpush1.bf16.msra.mxu1 %v1849_v4  ;;  %979 = vmatprep.subr.bf16.mxu0 %v1850_v5  ;;  %v1856_v9 = vld [vmem:[%s2632_s1 + $0x134] ss:$76 sps:$4 sm:$0xff]   ;;  %v1859_v11 = vld [vmem:[%s2632_s1 + $0x13c] ss:$76 sps:$4 sm:$0xff]   ;;  %v1862_v12 = vld [vmem:[%s2632_s1 + $0x1cc] ss:$76 sps:$4 sm:$0xff]  }
  0x2f   : > { %1032 = vmatprep.subr.bf16.mxu1 %v1853_v7  ;;  %s2644_s8 = smov (!%p179_p2, %s1657_s8), 7  ;;  %v1861_v13 = vld [vmem:[%s2632_s1 + $0x138] ss:$76 sps:$4 sm:$0xff]   ;;  %v1865_v14 = vld [vmem:[%s2632_s1 + $0x1d4] ss:$76 sps:$4 sm:$0xff]   ;;  %vm1521_vm1 = vcmask 523264  }
  0x30   : > { %v1864_v15 = vld [vmem:[%s2632_s1 + $0x1c8] ss:$76 sps:$4 sm:$0xff]   ;;  %v1868_v16 = vld [vmem:[%s2632_s1 + $0x264] ss:$76 sps:$4 sm:$0xff]   ;;  %s1658_s14 = sshll.u32 %s2644_s8, 3 }
  0x31   : > { %980 = vmatpush1.bf16.msra.mxu0 %v1852_v6  ;;  %v1867_v17 = vld [vmem:[%s2632_s1 + $0x1d0] ss:$76 sps:$4 sm:$0xff]   ;;  %v1871_v18 = vld [vmem:[%s2632_s1 + $0x26c] ss:$76 sps:$4 sm:$0xff]   ;;  %s2191_s22 = scalar_lea.vmem %s2631_s0, %s1658_s14  ;;  %v1873_v20 = vld [vmem:[%s2632_s1 + $0x268] ss:$76 sps:$4 sm:$0xff]  }
  0x32   : > { %981 = vmatprep.subr.bf16.mxu0 %v1856_v9  ;;  %1033 = vmatpush1.bf16.msra.mxu1 %v1855_v8  ;;  %v1870_v19 = vld [vmem:[%s2632_s1 + $0x260] ss:$76 sps:$4 sm:$0xff]   ;;  %v1874_v21 = vld [vmem:[%s2632_s1 + $0x2fc] ss:$76 sps:$4 sm:$0xff]   ;;  %v1876_v22 = vld [vmem:[%s2632_s1 + $0x2f8] ss:$76 sps:$4 sm:$0xff]  }
  0x33   : > { %1034 = vmatprep.subr.bf16.mxu1 %v1859_v11  ;;  %v1877_v23 = vld [vmem:[%s2632_s1 + $0x304] ss:$76 sps:$4 sm:$0xff]   ;;  %v193_v25 = vld [vmem:[%s2191_s22 + $0x8] sm:$0xff]  ;;  %v1882_v26 = vld [vmem:[%s2632_s1 + $0x14] ss:$76 sps:$4 sm:$0xff]   ;;  %s1821_s14 = smul.u32 152, %s2644_s8 }
  0x34   : > { %v192_v24 = vld [vmem:[%s2191_s22] sm:$0xff]  ;;  %v1885_v29 = vld [vmem:[%s2632_s1 + $0x1c] ss:$76 sps:$4 sm:$0xff]   ;;  %v1888_v31 = vld [vmem:[%s2632_s1 + $0xac] ss:$76 sps:$4 sm:$0xff]  }
  0x35   : > { %982 = vmatpush1.bf16.msra.mxu0 %v1858_v10  ;;  %v1879_v27 = vld [vmem:[%s2632_s1 + $0x300] ss:$76 sps:$4 sm:$0xff]   ;;  %v2213_v28 = vpack.c.bf16 %v193_v25, %v192_v24  ;;  %v1880_v30 = vld [vmem:[%s2632_s1 + $0x10] ss:$76 sps:$4 sm:$0xff]   ;;  %v1883_v32 = vld [vmem:[%s2632_s1 + $0x18] ss:$76 sps:$4 sm:$0xff]   ;;  %s2546_s17 = scalar_lea.vmem %s2634_s3, %s1821_s14 }
  0x36   : > { %983 = vmatprep.subr.bf16.mxu0 %v1862_v12  ;;  %1035 = vmatpush1.bf16.msra.mxu1 %v1861_v13  ;;  %v1891_v33 = vld [vmem:[%s2632_s1 + $0xb4] ss:$76 sps:$4 sm:$0xff]   ;;  %v195_v36 = vld [vmem:[%s2191_s22 + $0x18] sm:$0xff]  ;;  %v1894_v37 = vld [vmem:[%s2632_s1 + $0x144] ss:$76 sps:$4 sm:$0xff]  }
  0x37   : > { %1036 = vmatprep.subr.bf16.mxu1 %v1865_v14  ;;  %v1886_v34 = vld [vmem:[%s2632_s1 + $0xa8] ss:$76 sps:$4 sm:$0xff]   ;;  %v1889_v38 = vld [vmem:[%s2632_s1 + $0xb0] ss:$76 sps:$4 sm:$0xff]   ;;  %v1897_v39 = vld [vmem:[%s2632_s1 + $0x14c] ss:$76 sps:$4 sm:$0xff]  }
  0x38   : > { %v194_v35 = vld [vmem:[%s2191_s22 + $0x10] sm:$0xff]  ;;  %v1892_v41 = vld [vmem:[%s2632_s1 + $0x140] ss:$76 sps:$4 sm:$0xff]   ;;  %v1900_v42 = vld [vmem:[%s2632_s1 + $0x1dc] ss:$76 sps:$4 sm:$0xff]  }
  0x39   : > { %984 = vmatpush1.bf16.msra.mxu0 %v1864_v15  ;;  %v2250_v40 = vpack.c.bf16 %v195_v36, %v194_v35  ;;  %v1895_v43 = vld [vmem:[%s2632_s1 + $0x148] ss:$76 sps:$4 sm:$0xff]   ;;  %v1903_v44 = vld [vmem:[%s2632_s1 + $0x1e4] ss:$76 sps:$4 sm:$0xff]   ;;  %v1901_v47 = vld [vmem:[%s2632_s1 + $0x1e0] ss:$76 sps:$4 sm:$0xff]  }
  0x3a   : > { %985 = vmatprep.subr.bf16.mxu0 %v1868_v16  ;;  %1037 = vmatpush1.bf16.msra.mxu1 %v1867_v17  ;;  %v1898_v45 = vld [vmem:[%s2632_s1 + $0x1d8] ss:$76 sps:$4 sm:$0xff]   ;;  %v1906_v46 = vld [vmem:[%s2632_s1 + $0x274] ss:$76 sps:$4 sm:$0xff]   ;;  %v1909_v48 = vld [vmem:[%s2632_s1 + $0x27c] ss:$76 sps:$4 sm:$0xff]  }
  0x3b   : > { %1038 = vmatprep.subr.bf16.mxu1 %v1871_v18  ;;  %v1904_v49 = vld [vmem:[%s2632_s1 + $0x270] ss:$76 sps:$4 sm:$0xff]   ;;  %v1912_v50 = vld [vmem:[%s2632_s1 + $0x30c] ss:$76 sps:$4 sm:$0xff]   ;;  %v1915_v52 = vld [vmem:[%s2632_s1 + $0x314] ss:$76 sps:$4 sm:$0xff]  }
  0x3c   : > { %v1907_v51 = vld [vmem:[%s2632_s1 + $0x278] ss:$76 sps:$4 sm:$0xff]   ;;  %v1910_v53 = vld [vmem:[%s2632_s1 + $0x308] ss:$76 sps:$4 sm:$0xff]   ;;  %v1913_v55 = vld [vmem:[%s2632_s1 + $0x310] ss:$76 sps:$4 sm:$0xff]  }
  0x3d   : > { %986 = vmatpush1.bf16.msra.mxu0 %v1870_v19  ;;  %v1918_v54 = vld [vmem:[%s2632_s1 + $0x24] ss:$76 sps:$4 sm:$0xff]   ;;  %v1921_v56 = vld [vmem:[%s2632_s1 + $0x2c] ss:$76 sps:$4 sm:$0xff]   ;;  %v1924_v58 = vld [vmem:[%s2632_s1 + $0xbc] ss:$76 sps:$4 sm:$0xff]  }
  0x3e   : > { %987 = vmatprep.subr.bf16.mxu0 %v1874_v21  ;;  %1039 = vmatpush1.bf16.msra.mxu1 %v1873_v20  ;;  %v1916_v57 = vld [vmem:[%s2632_s1 + $0x20] ss:$76 sps:$4 sm:$0xff]   ;;  %v1919_v59 = vld [vmem:[%s2632_s1 + $0x28] ss:$76 sps:$4 sm:$0xff]   ;;  %v1927_v60 = vld [vmem:[%s2632_s1 + $0xc4] ss:$76 sps:$4 sm:$0xff]  }
  0x3f   : > { %1040 = vmatprep.subr.bf16.mxu1 %v1877_v23  ;;  %v1922_v61 = vld [vmem:[%s2632_s1 + $0xb8] ss:$76 sps:$4 sm:$0xff]   ;;  %v1930_v62 = vld [vmem:[%s2632_s1 + $0x154] ss:$76 sps:$4 sm:$0xff]   ;;  %v1933_v1 = vld [vmem:[%s2632_s1 + $0x15c] ss:$76 sps:$4 sm:$0xff]  }
  0x40   : > { %v1925_v63 = vld [vmem:[%s2632_s1 + $0xc0] ss:$76 sps:$4 sm:$0xff]   ;;  %v1928_v2 = vld [vmem:[%s2632_s1 + $0x150] ss:$76 sps:$4 sm:$0xff]   ;;  %v1931_v4 = vld [vmem:[%s2632_s1 + $0x158] ss:$76 sps:$4 sm:$0xff]  }
  0x41   : > { %988 = vmatpush1.bf16.msra.mxu0 %v1876_v22  ;;  %v1936_v3 = vld [vmem:[%s2632_s1 + $0x1ec] ss:$76 sps:$4 sm:$0xff]   ;;  %v1939_v5 = vld [vmem:[%s2632_s1 + $0x1f4] ss:$76 sps:$4 sm:$0xff]   ;;  %v1942_v7 = vld [vmem:[%s2632_s1 + $0x284] ss:$76 sps:$4 sm:$0xff]  }
  0x42   : > { %1083 = vmatprep.subr.bf16.mxu0 %v1882_v26  ;;  %1041 = vmatpush1.bf16.msra.mxu1 %v1879_v27  ;;  %v1934_v6 = vld [vmem:[%s2632_s1 + $0x1e8] ss:$76 sps:$4 sm:$0xff]   ;;  %v1937_v8 = vld [vmem:[%s2632_s1 + $0x1f0] ss:$76 sps:$4 sm:$0xff]   ;;  %v1945_v9 = vld [vmem:[%s2632_s1 + $0x28c] ss:$76 sps:$4 sm:$0xff]  }
  0x43   : > { %1136 = vmatprep.subr.bf16.mxu1 %v1885_v29  ;;  %v1940_v10 = vld [vmem:[%s2632_s1 + $0x280] ss:$76 sps:$4 sm:$0xff]   ;;  %v1948_v11 = vld [vmem:[%s2632_s1 + $0x31c] ss:$76 sps:$4 sm:$0xff]   ;;  %v1951_v13 = vld [vmem:[%s2632_s1 + $0x324] ss:$76 sps:$4 sm:$0xff]  }
  0x44   : > { %1775 = vmatmul.mubr.msk.bf16.vlgmr.msra.gmra.mrb[0].mxu0 %vm970_vm0, %v2213_v28  ;;  %v1943_v12 = vld [vmem:[%s2632_s1 + $0x288] ss:$76 sps:$4 sm:$0xff]   ;;  %v1946_v14 = vld [vmem:[%s2632_s1 + $0x318] ss:$76 sps:$4 sm:$0xff]   ;;  %v1949_v16 = vld [vmem:[%s2632_s1 + $0x320] ss:$76 sps:$4 sm:$0xff]  }
  0x45   : > { %1084 = vmatpush1.bf16.msra.mxu0 %v1880_v30  ;;  %1019 = vmatprep.mubr.bf16.mxu0 %v2055_v0  ;;  %v1954_v15 = vld [vmem:[%s2632_s1 + $0x34] ss:$76 sps:$4 sm:$0xff]   ;;  %v1957_v17 = vld [vmem:[%s2632_s1 + $0x3c] ss:$76 sps:$4 sm:$0xff]   ;;  %v1960_v19 = vld [vmem:[%s2632_s1 + $0xcc] ss:$76 sps:$4 sm:$0xff]  }
  0x46   : > { %1777 = vmatmul.mubr.msk.bf16.vlgmr.msra.gmra.mrb[0].mxu1 %vm970_vm0, %v2213_v28  ;;  %1085 = vmatprep.subr.bf16.mxu0 %v1888_v31  ;;  %v1952_v18 = vld [vmem:[%s2632_s1 + $0x30] ss:$76 sps:$4 sm:$0xff]   ;;  %v1955_v20 = vld [vmem:[%s2632_s1 + $0x38] ss:$76 sps:$4 sm:$0xff]   ;;  %v1963_v21 = vld [vmem:[%s2632_s1 + $0xd4] ss:$76 sps:$4 sm:$0xff]  }
  0x47   : > { %1137 = vmatpush1.bf16.msra.mxu1 %v1883_v32  ;;  %1072 = vmatprep.mubr.bf16.mxu1 %v2055_v0  ;;  %v1958_v22 = vld [vmem:[%s2632_s1 + $0xc8] ss:$76 sps:$4 sm:$0xff]   ;;  %v1966_v23 = vld [vmem:[%s2632_s1 + $0x164] ss:$76 sps:$4 sm:$0xff]   ;;  %v1969_v25 = vld [vmem:[%s2632_s1 + $0x16c] ss:$76 sps:$4 sm:$0xff]  }
  0x48   : > { %1138 = vmatprep.subr.bf16.mxu1 %v1891_v33  ;;  %v1961_v24 = vld [vmem:[%s2632_s1 + $0xd0] ss:$76 sps:$4 sm:$0xff]   ;;  %v1964_v26 = vld [vmem:[%s2632_s1 + $0x160] ss:$76 sps:$4 sm:$0xff]   ;;  %v1967_v29 = vld [vmem:[%s2632_s1 + $0x168] ss:$76 sps:$4 sm:$0xff]  }
  0x49   : > { %1086 = vmatpush1.bf16.msra.mxu0 %v1886_v34  ;;  %v1972_v27 = vld [vmem:[%s2632_s1 + $0x1fc] ss:$76 sps:$4 sm:$0xff]   ;;  %v1975_v30 = vld [vmem:[%s2632_s1 + $0x204] ss:$76 sps:$4 sm:$0xff]   ;;  %v1978_v32 = vld [vmem:[%s2632_s1 + $0x294] ss:$76 sps:$4 sm:$0xff]  }
  0x4a   : > { %1087 = vmatprep.subr.bf16.mxu0 %v1894_v37  ;;  %v1970_v31 = vld [vmem:[%s2632_s1 + $0x1f8] ss:$76 sps:$4 sm:$0xff]   ;;  %v1973_v33 = vld [vmem:[%s2632_s1 + $0x200] ss:$76 sps:$4 sm:$0xff]   ;;  %v1981_v34 = vld [vmem:[%s2632_s1 + $0x29c] ss:$76 sps:$4 sm:$0xff]  }
  0x4b   : > { %1139 = vmatpush1.bf16.msra.mxu1 %v1889_v38  ;;  %v1976_v35 = vld [vmem:[%s2632_s1 + $0x290] ss:$76 sps:$4 sm:$0xff]   ;;  %v1984_v36 = vld [vmem:[%s2632_s1 + $0x32c] ss:$76 sps:$4 sm:$0xff]   ;;  %v1987_v38 = vld [vmem:[%s2632_s1 + $0x334] ss:$76 sps:$4 sm:$0xff]  }
  0x4c   : > { %1140 = vmatprep.subr.bf16.mxu1 %v1897_v39  ;;  %1776 = vmatmul.mubr.msk.bf16.gmra.mrb[4].mxu0 %vm970_vm0, %v2250_v40  ;;  %v1979_v37 = vld [vmem:[%s2632_s1 + $0x298] ss:$76 sps:$4 sm:$0xff]   ;;  %v1982_v39 = vld [vmem:[%s2632_s1 + $0x328] ss:$76 sps:$4 sm:$0xff]  }
  0x4d   : > { %1088 = vmatpush1.bf16.msra.mxu0 %v1892_v41  ;;  %1115 = vmatprep.mubr.bf16.mxu0 %v2055_v0  ;;  %v1990_v41 = vld [vmem:[%s2632_s1 + $0x44] ss:$76 sps:$4 sm:$0xff]  }
  0x4e   : > { %1089 = vmatprep.subr.bf16.mxu0 %v1900_v42  ;;  %1778 = vmatmul.mubr.msk.bf16.gmra.mrb[4].mxu1 %vm970_vm0, %v2250_v40  ;;  %v1985_v42 = vld [vmem:[%s2632_s1 + $0x330] ss:$76 sps:$4 sm:$0xff]  }
  0x4f   : > { %1141 = vmatpush1.bf16.msra.mxu1 %v1895_v43  ;;  %1168 = vmatprep.mubr.bf16.mxu1 %v2055_v0  ;;  %v1991_v43 = vld [vmem:[%s2632_s1 + $0x48] ss:$76 sps:$4 sm:$0xff]  }
  0x50   : > { %1142 = vmatprep.subr.bf16.mxu1 %v1903_v44  ;;  %v1988_v44 = vld [vmem:[%s2632_s1 + $0x40] ss:$76 sps:$4 sm:$0xff]  }
  0x51   : > { %1090 = vmatpush1.bf16.msra.mxu0 %v1898_v45  ;;  %v1994_v45 = vld [vmem:[%s2632_s1 + $0xdc] ss:$76 sps:$4 sm:$0xff]  }
  0x52   : > { %1091 = vmatprep.subr.bf16.mxu0 %v1906_v46  ;;  %v1995_v46 = vld [vmem:[%s2632_s1 + $0xe0] ss:$76 sps:$4 sm:$0xff]  }
  0x53   : > { %1143 = vmatpush1.bf16.msra.mxu1 %v1901_v47  ;;  %v1992_v47 = vld [vmem:[%s2632_s1 + $0xd8] ss:$76 sps:$4 sm:$0xff]  }
  0x54   : > { %1144 = vmatprep.subr.bf16.mxu1 %v1909_v48  ;;  %v1998_v48 = vld [vmem:[%s2632_s1 + $0x174] ss:$76 sps:$4 sm:$0xff]  }
  0x55   : > { %1092 = vmatpush1.bf16.msra.mxu0 %v1904_v49  ;;  %v1999_v49 = vld [vmem:[%s2632_s1 + $0x178] ss:$76 sps:$4 sm:$0xff]  }
  0x56   : > { %1093 = vmatprep.subr.bf16.mxu0 %v1912_v50  ;;  %v1996_v50 = vld [vmem:[%s2632_s1 + $0x170] ss:$76 sps:$4 sm:$0xff]  }
  0x57   : > { %1145 = vmatpush1.bf16.msra.mxu1 %v1907_v51  ;;  %v2002_v51 = vld [vmem:[%s2632_s1 + $0x20c] ss:$76 sps:$4 sm:$0xff]  }
  0x58   : > { %1146 = vmatprep.subr.bf16.mxu1 %v1915_v52  ;;  %v2003_v52 = vld [vmem:[%s2632_s1 + $0x210] ss:$76 sps:$4 sm:$0xff]  }
  0x59   : > { %1094 = vmatpush1.bf16.msra.mxu0 %v1910_v53  ;;  %v2000_v53 = vld [vmem:[%s2632_s1 + $0x208] ss:$76 sps:$4 sm:$0xff]  }
  0x5a   : > { %1189 = vmatprep.subr.bf16.mxu0 %v1918_v54  ;;  %v2006_v54 = vld [vmem:[%s2632_s1 + $0x2a4] ss:$76 sps:$4 sm:$0xff]  }
  0x5b   : > { %1147 = vmatpush1.bf16.msra.mxu1 %v1913_v55  ;;  %v2007_v55 = vld [vmem:[%s2632_s1 + $0x2a8] ss:$76 sps:$4 sm:$0xff]  }
  0x5c   : > { %1779 = vmatmul.mubr.msk.bf16.vlgmr.msra.gmra.mrb[8].mxu0 %vm970_vm0, %v2213_v28  ;;  %1242 = vmatprep.subr.bf16.mxu1 %v1921_v56  ;;  %v2004_v56 = vld [vmem:[%s2632_s1 + $0x2a0] ss:$76 sps:$4 sm:$0xff]  }
  0x5d   : > { %1190 = vmatpush1.bf16.msra.mxu0 %v1916_v57  ;;  %1125 = vmatprep.mubr.bf16.mxu0 %v2055_v0  ;;  %v2010_v57 = vld [vmem:[%s2632_s1 + $0x33c] ss:$76 sps:$4 sm:$0xff]  }
  0x5e   : > { %1781 = vmatmul.mubr.msk.bf16.vlgmr.msra.gmra.mrb[8].mxu1 %vm970_vm0, %v2213_v28  ;;  %1191 = vmatprep.subr.bf16.mxu0 %v1924_v58  ;;  %v2011_v58 = vld [vmem:[%s2632_s1 + $0x340] ss:$76 sps:$4 sm:$0xff]  }
  0x5f   : > { %1243 = vmatpush1.bf16.msra.mxu1 %v1919_v59  ;;  %1178 = vmatprep.mubr.bf16.mxu1 %v2055_v0  ;;  %v2008_v59 = vld [vmem:[%s2632_s1 + $0x338] ss:$76 sps:$4 sm:$0xff]  }
  0x60   : > { %1244 = vmatprep.subr.bf16.mxu1 %v1927_v60  ;;  %v318_v60 = vld [vmem:[#allocation2] sm:$0xff] }
  0x61   : > { %1192 = vmatpush1.bf16.msra.mxu0 %v1922_v61  ;;  %v319_v61 = vld [vmem:[#allocation2 + $0x8] sm:$0xff] }
  0x62   : > { %1193 = vmatprep.subr.bf16.mxu0 %v1930_v62 }
  0x63   : > { %1245 = vmatpush1.bf16.msra.mxu1 %v1925_v63  ;;  %v337_v63 = vld [vmem:[#allocation2 + $0x98] sm:$0xff] }
  0x64   : > { %1246 = vmatprep.subr.bf16.mxu1 %v1933_v1  ;;  %1780 = vmatmul.mubr.msk.bf16.gmra.mrb[12].mxu0 %vm970_vm0, %v2250_v40 }
  0x65   : > { %1194 = vmatpush1.bf16.msra.mxu0 %v1928_v2  ;;  %1221 = vmatprep.mubr.bf16.mxu0 %v2055_v0  ;;  %v338_v2 = vld [vmem:[#allocation2 + $0xa0] sm:$0xff] }
  0x66   : > { %1195 = vmatprep.subr.bf16.mxu0 %v1936_v3  ;;  %1782 = vmatmul.mubr.msk.bf16.gmra.mrb[12].mxu1 %vm970_vm0, %v2250_v40  ;;  %v321_v3 = vld [vmem:[#allocation2 + $0x18] sm:$0xff] }
  0x67   : > { %1247 = vmatpush1.bf16.msra.mxu1 %v1931_v4  ;;  %1274 = vmatprep.mubr.bf16.mxu1 %v2055_v0 }
  0x68   : > { %1248 = vmatprep.subr.bf16.mxu1 %v1939_v5 }
  0x69   : > { %1196 = vmatpush1.bf16.msra.mxu0 %v1934_v6  ;;  %v339_v6 = vld [vmem:[#allocation2 + $0xa8] sm:$0xff] }
  0x6a   : > { %1197 = vmatprep.subr.bf16.mxu0 %v1942_v7 }
  0x6b   : > { %1249 = vmatpush1.bf16.msra.mxu1 %v1937_v8 }
  0x6c   : > { %1250 = vmatprep.subr.bf16.mxu1 %v1945_v9 }
  0x6d   : > { %1198 = vmatpush1.bf16.msra.mxu0 %v1940_v10 }
  0x6e   : > { %1199 = vmatprep.subr.bf16.mxu0 %v1948_v11  ;;  %v340_v11 = vld [vmem:[#allocation2 + $0xb0] sm:$0xff] }
  0x6f   : > { %1251 = vmatpush1.bf16.msra.mxu1 %v1943_v12 }
  0x70   : > { %1252 = vmatprep.subr.bf16.mxu1 %v1951_v13 }
  0x71   : > { %1200 = vmatpush1.bf16.msra.mxu0 %v1946_v14 }
  0x72   : > { %1295 = vmatprep.subr.bf16.mxu0 %v1954_v15 }
  0x73   : > { %1253 = vmatpush1.bf16.msra.mxu1 %v1949_v16 }
  0x74   : > { %1783 = vmatmul.mubr.msk.bf16.vlgmr.msra.gmra.mrb[16].mxu0 %vm970_vm0, %v2213_v28  ;;  %1348 = vmatprep.subr.bf16.mxu1 %v1957_v17 }
  0x75   : > { %1296 = vmatpush1.bf16.msra.mxu0 %v1952_v18  ;;  %1231 = vmatprep.mubr.bf16.mxu0 %v2055_v0  ;;  %v356_v18 = vld [vmem:[#allocation2 + $0x130] sm:$0xff] }
  0x76   : > { %1785 = vmatmul.mubr.msk.bf16.vlgmr.msra.gmra.mrb[16].mxu1 %vm970_vm0, %v2213_v28  ;;  %1297 = vmatprep.subr.bf16.mxu0 %v1960_v19  ;;  %v357_v19 = vld [vmem:[#allocation2 + $0x138] sm:$0xff] }
  0x77   : > { %1349 = vmatpush1.bf16.msra.mxu1 %v1955_v20  ;;  %1284 = vmatprep.mubr.bf16.mxu1 %v2055_v0 }
  0x78   : > { %1350 = vmatprep.subr.bf16.mxu1 %v1963_v21  ;;  %v375_v21 = vld [vmem:[#allocation2 + $0x1c8] sm:$0xff] }
  0x79   : > { %1298 = vmatpush1.bf16.msra.mxu0 %v1958_v22  ;;  %v358_v22 = vld [vmem:[#allocation2 + $0x140] sm:$0xff] }
  0x7a   : > { %1299 = vmatprep.subr.bf16.mxu0 %v1966_v23 }
  0x7b   : > { %1351 = vmatpush1.bf16.msra.mxu1 %v1961_v24 }
  0x7c   : > { %1352 = vmatprep.subr.bf16.mxu1 %v1969_v25  ;;  %1784 = vmatmul.mubr.msk.bf16.gmra.mrb[20].mxu0 %vm970_vm0, %v2250_v40  ;;  %v376_v25 = vld [vmem:[#allocation2 + $0x1d0] sm:$0xff] }
  0x7d   : > { %1300 = vmatpush1.bf16.msra.mxu0 %v1964_v26  ;;  %1327 = vmatprep.mubr.bf16.mxu0 %v2055_v0  ;;  %v359_v26 = vld [vmem:[#allocation2 + $0x148] sm:$0xff] }
  0x7e   : > { %1301 = vmatprep.subr.bf16.mxu0 %v1972_v27  ;;  %1786 = vmatmul.mubr.msk.bf16.gmra.mrb[20].mxu1 %vm970_vm0, %v2250_v40 }
  0x7f   : > { %1353 = vmatpush1.bf16.msra.mxu1 %v1967_v29  ;;  %1380 = vmatprep.mubr.bf16.mxu1 %v2055_v0 }
  0x80   : > { %1354 = vmatprep.subr.bf16.mxu1 %v1975_v30 }
  0x81   : > { %1302 = vmatpush1.bf16.msra.mxu0 %v1970_v31  ;;  %v377_v31 = vld [vmem:[#allocation2 + $0x1d8] sm:$0xff] }
  0x82   : > { %1303 = vmatprep.subr.bf16.mxu0 %v1978_v32 }
  0x83   : > { %1355 = vmatpush1.bf16.msra.mxu1 %v1973_v33 }
  0x84   : > { %1356 = vmatprep.subr.bf16.mxu1 %v1981_v34 }
  0x85   : > { %1304 = vmatpush1.bf16.msra.mxu0 %v1976_v35 }
  0x86   : > { %1305 = vmatprep.subr.bf16.mxu0 %v1984_v36  ;;  %v378_v36 = vld [vmem:[#allocation2 + $0x1e0] sm:$0xff] }
  0x87   : > { %1357 = vmatpush1.bf16.msra.mxu1 %v1979_v37 }
  0x88   : > { %1358 = vmatprep.subr.bf16.mxu1 %v1987_v38 }
  0x89   : > { %1306 = vmatpush1.bf16.msra.mxu0 %v1982_v39 }
  0x8a   : > { %1401 = vmatprep.subr.bf16.mxu0 %v1990_v41 }
  0x8b   : > { %1359 = vmatpush1.bf16.msra.mxu1 %v1985_v42 }
  0x8c   : > { %1787 = vmatmul.mubr.msk.bf16.vlgmr.msra.gmra.mrb[24].mxu0 %vm970_vm0, %v2213_v28  ;;  %1805 = vmatprep.subr.bf16.mxu1 %v1991_v43 }
  0x8d   : > { %1402 = vmatpush1.bf16.msra.mxu0 %v1988_v44  ;;  %1337 = vmatprep.mubr.bf16.mxu0 %v2055_v0  ;;  %v322_v44 = vld [vmem:[#allocation2 + $0x20] sm:$0xff] }
  0x8e   : > { %1789 = vmatmul.mubr.msk.bf16.vlgmr.msra.gmra.mrb[24].mxu1 %vm970_vm0, %v2213_v28  ;;  %1403 = vmatprep.subr.bf16.mxu0 %v1994_v45  ;;  %v323_v45 = vld [vmem:[#allocation2 + $0x28] sm:$0xff] }
  0x8f   : > { %1806 = vmatpush3.bf16.msra.mxu1 %v1991_v43  ;;  %1390 = vmatprep.mubr.bf16.mxu1 %v2055_v0 }
  0x90   : > { %1807 = vmatprep.subr.bf16.mxu1 %v1995_v46 }
  0x91   : > { %1404 = vmatpush1.bf16.msra.mxu0 %v1992_v47  ;;  %v341_v47 = vld [vmem:[#allocation2 + $0xb8] sm:$0xff] }
  0x92   : > { %1405 = vmatprep.subr.bf16.mxu0 %v1998_v48  ;;  %v324_v48 = vld [vmem:[#allocation2 + $0x30] sm:$0xff] }
  0x93   : > { %1808 = vmatpush3.bf16.msra.mxu1 %v1995_v46 }
  0x94   : > { %1809 = vmatprep.subr.bf16.mxu1 %v1999_v49  ;;  %1788 = vmatmul.mubr.msk.bf16.gmra.mrb[28].mxu0 %vm970_vm0, %v2250_v40 }
  0x95   : > { %1406 = vmatpush1.bf16.msra.mxu0 %v1996_v50  ;;  %1433 = vmatprep.mubr.bf16.mxu0 %v2055_v0 }
  0x96   : > { %1407 = vmatprep.subr.bf16.mxu0 %v2002_v51  ;;  %1790 = vmatmul.mubr.msk.bf16.gmra.mrb[28].mxu1 %vm970_vm0, %v2250_v40  ;;  %v342_v51 = vld [vmem:[#allocation2 + $0xc0] sm:$0xff] }
  0x97   : > { %1810 = vmatpush3.bf16.msra.mxu1 %v1999_v49  ;;  %1817 = vmatprep.mubr.msk.bf16.mxu1 %vm970_vm0, %v2213_v28 }
  0x98   : > { %1811 = vmatprep.subr.bf16.mxu1 %v2003_v52 }
  0x99   : > { %1408 = vmatpush1.bf16.msra.mxu0 %v2000_v53 }
  0x9a   : > { %1409 = vmatprep.subr.bf16.mxu0 %v2006_v54 }
  0x9b   : > { %1812 = vmatpush3.bf16.msra.mxu1 %v2003_v52  ;;  %v325_v52 = vld [vmem:[#allocation2 + $0x38] sm:$0xff] }
  0x9c   : > { %1813 = vmatprep.subr.bf16.mxu1 %v2007_v55 }
  0x9d   : > { %1410 = vmatpush1.bf16.msra.mxu0 %v2004_v56  ;;  %v343_v56 = vld [vmem:[#allocation2 + $0xc8] sm:$0xff] }
  0x9e   : > { %1411 = vmatprep.subr.bf16.mxu0 %v2010_v57 }
  0x9f   : > { %1814 = vmatpush3.bf16.msra.mxu1 %v2007_v55 }
  0xa0   : > { %1815 = vmatprep.subr.bf16.mxu1 %v2011_v58 }
  0xa1   : > { %1412 = vmatpush1.bf16.msra.mxu0 %v2008_v59 }
  0xa3   : > { %1816 = vmatpush3.bf16.msra.mxu1 %v2011_v58 }
  0xa4   : > { %1791 = vmatmul.mubr.msk.bf16.vlgmr.msra.gmra.mrb[32].mxu0 %vm970_vm0, %v2213_v28  ;;  %v320_v28 = vld [vmem:[#allocation2 + $0x10] sm:$0xff] }
  0xa5   : > { %1443 = vmatprep.mubr.bf16.mxu0 %v2055_v0 }
  0xa6   : > { %1818 = vmatmul.mubr.msk.bf16.vlgmr.msra.gmra.mrb[32].mxu1 %vm970_vm0, %v2250_v40 }
  0xac   : > { %1792 = vmatmul.mubr.msk.bf16.gmra.mrb[36].mxu0 %vm970_vm0, %v2250_v40 }
 0x117   : > { %v1011_v62 = vpop.f32.mrb[0].mxu0 }
 0x118   : > { %v1012_v0 = vadd.f32 %v1011_v62, %v318_v60  ;;  %v1013_v1 = vpop.f32.mrb[1].mxu0 }
 0x119   : > { %v1014_v40 = vadd.f32 %v1013_v1, %v319_v61  ;;  %v1015_v4 = vpop.f32.mrb[2].mxu0  ;;  %v1064_v5 = vpop.f32.mrb[0].mxu1  ;;  %v344_v61 = vld [vmem:[#allocation2 + $0xd0] sm:$0xff] }
 0x11a   : > { %1503 = vst [vmem:[%s2546_s17] sm:$0xff] %v1012_v0  ;;  %v1016_v7 = vadd.f32 %v1015_v4, %v337_v63  ;;  %v1017_v8 = vpop.f32.mrb[3].mxu0  ;;  %v1065_v9 = vadd.f32 %v1064_v5, %v320_v28  ;;  %v1066_v10 = vpop.f32.mrb[1].mxu1  ;;  %v379_v5 = vld [vmem:[#allocation2 + $0x1e8] sm:$0xff] }
 0x11b   : > { %1504 = vst [vmem:[%s2546_s17 + $0x8] sm:$0xff] %v1014_v40  ;;  %v1018_v12 = vadd.f32 %v1017_v8, %v338_v2  ;;  %v1067_v13 = vadd.f32 %v1066_v10, %v321_v3  ;;  %v1068_v14 = vpop.f32.mrb[2].mxu1  ;;  %v360_v3 = vld [vmem:[#allocation2 + $0x150] sm:$0xff]  ;;  %v361_v40 = vld [vmem:[#allocation2 + $0x158] sm:$0xff]  ;;  %v363_v10 = vld [vmem:[#allocation2 + $0x168] sm:$0xff] }
 0x11c   : > { %1523 = vst [vmem:[%s2546_s17 + $0x98] sm:$0xff] %v1016_v7  ;;  %1505 = vst [vmem:[%s2546_s17 + $0x10] sm:$0xff] %v1065_v9  ;;  %v1069_v15 = vadd.f32 %v1068_v14, %v339_v6  ;;  %v1070_v16 = vpop.f32.mrb[3].mxu1  ;;  %v362_v6 = vld [vmem:[#allocation2 + $0x160] sm:$0xff]  ;;  %v380_v9 = vld [vmem:[#allocation2 + $0x1f0] sm:$0xff] }
 0x11d   : > { %1524 = vst [vmem:[%s2546_s17 + $0xa0] sm:$0xff] %v1018_v12  ;;  %1506 = vst [vmem:[%s2546_s17 + $0x18] sm:$0xff] %v1067_v13  ;;  %v1071_v17 = vadd.f32 %v1070_v16, %v340_v11  ;;  %v381_v14 = vld [vmem:[#allocation2 + $0x1f8] sm:$0xff] }
 0x11e   : > { %1525 = vst [vmem:[%s2546_s17 + $0xa8] sm:$0xff] %v1069_v15 }
 0x11f   : > { %1526 = vst [vmem:[%s2546_s17 + $0xb0] sm:$0xff] %v1071_v17  ;;  %v1021_v20 = vpop.f32.mrb[4].mxu0 }
 0x120   : > { %v1022_v23 = vadd.f32 %v1021_v20, %v356_v18  ;;  %v1023_v24 = vpop.f32.mrb[5].mxu0 }
 0x121   : > { %v1024_v27 = vadd.f32 %v1023_v24, %v357_v19  ;;  %v1025_v29 = vpop.f32.mrb[6].mxu0  ;;  %v1074_v30 = vpop.f32.mrb[4].mxu1  ;;  %v382_v19 = vld [vmem:[#allocation2 + $0x200] sm:$0xff] }
 0x122   : > { %1542 = vst [vmem:[%s2546_s17 + $0x130] sm:$0xff] %v1022_v23  ;;  %v1026_v32 = vadd.f32 %v1025_v29, %v375_v21  ;;  %v1027_v33 = vpop.f32.mrb[7].mxu0  ;;  %v1075_v34 = vadd.f32 %v1074_v30, %v358_v22  ;;  %v1076_v35 = vpop.f32.mrb[5].mxu1  ;;  %v345_v30 = vld [vmem:[#allocation2 + $0xd8] sm:$0xff] }
 0x123   : > { %1543 = vst [vmem:[%s2546_s17 + $0x138] sm:$0xff] %v1024_v27  ;;  %v1028_v37 = vadd.f32 %v1027_v33, %v376_v25  ;;  %v1077_v38 = vadd.f32 %v1076_v35, %v359_v26  ;;  %v1078_v39 = vpop.f32.mrb[6].mxu1  ;;  %v326_v26 = vld [vmem:[#allocation2 + $0x40] sm:$0xff]  ;;  %v327_v27 = vld [vmem:[#allocation2 + $0x48] sm:$0xff]  ;;  %v329_v35 = vld [vmem:[#allocation2 + $0x58] sm:$0xff] }
 0x124   : > { %1561 = vst [vmem:[%s2546_s17 + $0x1c8] sm:$0xff] %v1026_v32  ;;  %1544 = vst [vmem:[%s2546_s17 + $0x140] sm:$0xff] %v1075_v34  ;;  %v1079_v41 = vadd.f32 %v1078_v39, %v377_v31  ;;  %v1080_v42 = vpop.f32.mrb[7].mxu1  ;;  %v328_v31 = vld [vmem:[#allocation2 + $0x50] sm:$0xff]  ;;  %v346_v34 = vld [vmem:[#allocation2 + $0xe0] sm:$0xff] }
 0x125   : > { %1562 = vst [vmem:[%s2546_s17 + $0x1d0] sm:$0xff] %v1028_v37  ;;  %1545 = vst [vmem:[%s2546_s17 + $0x148] sm:$0xff] %v1077_v38  ;;  %v1081_v43 = vadd.f32 %v1080_v42, %v378_v36  ;;  %v347_v39 = vld [vmem:[#allocation2 + $0xe8] sm:$0xff] }
 0x126   : > { %1563 = vst [vmem:[%s2546_s17 + $0x1d8] sm:$0xff] %v1079_v41 }
 0x127   : > { %1564 = vst [vmem:[%s2546_s17 + $0x1e0] sm:$0xff] %v1081_v43 }
 0x12f   : > { %v1117_v46 = vpop.f32.mrb[8].mxu0 }
 0x130   : > { %v1118_v49 = vadd.f32 %v1117_v46, %v322_v44  ;;  %v1119_v50 = vpop.f32.mrb[9].mxu0 }
 0x131   : > { %v1120_v53 = vadd.f32 %v1119_v50, %v323_v45  ;;  %v1121_v54 = vpop.f32.mrb[10].mxu0  ;;  %v1170_v55 = vpop.f32.mrb[8].mxu1  ;;  %v348_v45 = vld [vmem:[#allocation2 + $0xf0] sm:$0xff] }
 0x132   : > { %1507 = vst [vmem:[%s2546_s17 + $0x20] sm:$0xff] %v1118_v49  ;;  %v1122_v57 = vadd.f32 %v1121_v54, %v341_v47  ;;  %v1123_v58 = vpop.f32.mrb[11].mxu0  ;;  %v1171_v59 = vadd.f32 %v1170_v55, %v324_v48  ;;  %v1172_v60 = vpop.f32.mrb[9].mxu1  ;;  %v383_v55 = vld [vmem:[#allocation2 + $0x208] sm:$0xff] }
 0x133   : > { %1508 = vst [vmem:[%s2546_s17 + $0x28] sm:$0xff] %v1120_v53  ;;  %v1124_v62 = vadd.f32 %v1123_v58, %v342_v51  ;;  %v1173_v63 = vadd.f32 %v1172_v60, %v325_v52  ;;  %v1174_v28 = vpop.f32.mrb[10].mxu1  ;;  %v364_v52 = vld [vmem:[#allocation2 + $0x170] sm:$0xff]  ;;  %v365_v53 = vld [vmem:[#allocation2 + $0x178] sm:$0xff]  ;;  %v367_v60 = vld [vmem:[#allocation2 + $0x188] sm:$0xff] }
 0x134   : > { %1527 = vst [vmem:[%s2546_s17 + $0xb8] sm:$0xff] %v1122_v57  ;;  %1509 = vst [vmem:[%s2546_s17 + $0x30] sm:$0xff] %v1171_v59  ;;  %v1175_v0 = vadd.f32 %v1174_v28, %v343_v56  ;;  %v1176_v1 = vpop.f32.mrb[11].mxu1  ;;  %v366_v56 = vld [vmem:[#allocation2 + $0x180] sm:$0xff]  ;;  %v384_v59 = vld [vmem:[#allocation2 + $0x210] sm:$0xff] }
 0x135   : > { %1528 = vst [vmem:[%s2546_s17 + $0xc0] sm:$0xff] %v1124_v62  ;;  %1510 = vst [vmem:[%s2546_s17 + $0x38] sm:$0xff] %v1173_v63  ;;  %v1177_v2 = vadd.f32 %v1176_v1, %v344_v61  ;;  %v385_v28 = vld [vmem:[#allocation2 + $0x218] sm:$0xff] }
 0x136   : > { %1529 = vst [vmem:[%s2546_s17 + $0xc8] sm:$0xff] %v1175_v0 }
 0x137   : > { %1530 = vst [vmem:[%s2546_s17 + $0xd0] sm:$0xff] %v1177_v2  ;;  %v1127_v4 = vpop.f32.mrb[12].mxu0 }
 0x138   : > { %v1128_v7 = vadd.f32 %v1127_v4, %v360_v3  ;;  %v1129_v8 = vpop.f32.mrb[13].mxu0 }
 0x139   : > { %v1130_v11 = vadd.f32 %v1129_v8, %v361_v40  ;;  %v1131_v12 = vpop.f32.mrb[14].mxu0  ;;  %v1180_v13 = vpop.f32.mrb[12].mxu1  ;;  %v386_v40 = vld [vmem:[#allocation2 + $0x220] sm:$0xff] }
 0x13a   : > { %1546 = vst [vmem:[%s2546_s17 + $0x150] sm:$0xff] %v1128_v7  ;;  %v1132_v15 = vadd.f32 %v1131_v12, %v379_v5  ;;  %v1133_v16 = vpop.f32.mrb[15].mxu0  ;;  %v1181_v17 = vadd.f32 %v1180_v13, %v362_v6  ;;  %v1182_v18 = vpop.f32.mrb[13].mxu1  ;;  %v349_v13 = vld [vmem:[#allocation2 + $0xf8] sm:$0xff] }
 0x13b   : > { %1547 = vst [vmem:[%s2546_s17 + $0x158] sm:$0xff] %v1130_v11  ;;  %v1134_v20 = vadd.f32 %v1133_v16, %v380_v9  ;;  %v1183_v21 = vadd.f32 %v1182_v18, %v363_v10  ;;  %v1184_v22 = vpop.f32.mrb[14].mxu1  ;;  %v330_v10 = vld [vmem:[#allocation2 + $0x60] sm:$0xff]  ;;  %v331_v11 = vld [vmem:[#allocation2 + $0x68] sm:$0xff]  ;;  %v333_v18 = vld [vmem:[#allocation2 + $0x78] sm:$0xff] }
 0x13c   : > { %1565 = vst [vmem:[%s2546_s17 + $0x1e8] sm:$0xff] %v1132_v15  ;;  %1548 = vst [vmem:[%s2546_s17 + $0x160] sm:$0xff] %v1181_v17  ;;  %v1185_v23 = vadd.f32 %v1184_v22, %v381_v14  ;;  %v1186_v24 = vpop.f32.mrb[15].mxu1  ;;  %v332_v14 = vld [vmem:[#allocation2 + $0x70] sm:$0xff]  ;;  %v350_v17 = vld [vmem:[#allocation2 + $0x100] sm:$0xff] }
 0x13d   : > { %1566 = vst [vmem:[%s2546_s17 + $0x1f0] sm:$0xff] %v1134_v20  ;;  %1549 = vst [vmem:[%s2546_s17 + $0x168] sm:$0xff] %v1183_v21  ;;  %v1187_v25 = vadd.f32 %v1186_v24, %v382_v19  ;;  %v351_v22 = vld [vmem:[#allocation2 + $0x108] sm:$0xff] }
 0x13e   : > { %1567 = vst [vmem:[%s2546_s17 + $0x1f8] sm:$0xff] %v1185_v23 }
 0x13f   : > { %1568 = vst [vmem:[%s2546_s17 + $0x200] sm:$0xff] %v1187_v25 }
 0x147   : > { %v1223_v29 = vpop.f32.mrb[16].mxu0 }
 0x148   : > { %v1224_v32 = vadd.f32 %v1223_v29, %v326_v26  ;;  %v1225_v33 = vpop.f32.mrb[17].mxu0 }
 0x149   : > { %v1226_v36 = vadd.f32 %v1225_v33, %v327_v27  ;;  %v1227_v37 = vpop.f32.mrb[18].mxu0  ;;  %v1276_v38 = vpop.f32.mrb[16].mxu1  ;;  %v352_v27 = vld [vmem:[#allocation2 + $0x110] sm:$0xff] }
 0x14a   : > { %1511 = vst [vmem:[%s2546_s17 + $0x40] sm:$0xff] %v1224_v32  ;;  %v1228_v41 = vadd.f32 %v1227_v37, %v345_v30  ;;  %v1229_v42 = vpop.f32.mrb[19].mxu0  ;;  %v1277_v43 = vadd.f32 %v1276_v38, %v328_v31  ;;  %v1278_v44 = vpop.f32.mrb[17].mxu1  ;;  %v387_v38 = vld [vmem:[#allocation2 + $0x228] sm:$0xff] }
 0x14b   : > { %1512 = vst [vmem:[%s2546_s17 + $0x48] sm:$0xff] %v1226_v36  ;;  %v1230_v46 = vadd.f32 %v1229_v42, %v346_v34  ;;  %v1279_v47 = vadd.f32 %v1278_v44, %v329_v35  ;;  %v1280_v48 = vpop.f32.mrb[18].mxu1  ;;  %v368_v35 = vld [vmem:[#allocation2 + $0x190] sm:$0xff]  ;;  %v369_v36 = vld [vmem:[#allocation2 + $0x198] sm:$0xff]  ;;  %v371_v44 = vld [vmem:[#allocation2 + $0x1a8] sm:$0xff] }
 0x14c   : > { %1531 = vst [vmem:[%s2546_s17 + $0xd8] sm:$0xff] %v1228_v41  ;;  %1513 = vst [vmem:[%s2546_s17 + $0x50] sm:$0xff] %v1277_v43  ;;  %v1281_v49 = vadd.f32 %v1280_v48, %v347_v39  ;;  %v1282_v50 = vpop.f32.mrb[19].mxu1  ;;  %v370_v39 = vld [vmem:[#allocation2 + $0x1a0] sm:$0xff]  ;;  %v388_v43 = vld [vmem:[#allocation2 + $0x230] sm:$0xff] }
 0x14d   : > { %1532 = vst [vmem:[%s2546_s17 + $0xe0] sm:$0xff] %v1230_v46  ;;  %1514 = vst [vmem:[%s2546_s17 + $0x58] sm:$0xff] %v1279_v47  ;;  %v1283_v51 = vadd.f32 %v1282_v50, %v348_v45  ;;  %v389_v48 = vld [vmem:[#allocation2 + $0x238] sm:$0xff] }
 0x14e   : > { %1533 = vst [vmem:[%s2546_s17 + $0xe8] sm:$0xff] %v1281_v49 }
 0x14f   : > { %1534 = vst [vmem:[%s2546_s17 + $0xf0] sm:$0xff] %v1283_v51  ;;  %v1233_v54 = vpop.f32.mrb[20].mxu0 }
 0x150   : > { %v1234_v57 = vadd.f32 %v1233_v54, %v364_v52  ;;  %v1235_v58 = vpop.f32.mrb[21].mxu0 }
 0x151   : > { %v1236_v61 = vadd.f32 %v1235_v58, %v365_v53  ;;  %v1237_v62 = vpop.f32.mrb[22].mxu0  ;;  %v1286_v63 = vpop.f32.mrb[20].mxu1  ;;  %v390_v53 = vld [vmem:[#allocation2 + $0x240] sm:$0xff] }
 0x152   : > { %1550 = vst [vmem:[%s2546_s17 + $0x170] sm:$0xff] %v1234_v57  ;;  %v1238_v0 = vadd.f32 %v1237_v62, %v383_v55  ;;  %v1239_v1 = vpop.f32.mrb[23].mxu0  ;;  %v1287_v2 = vadd.f32 %v1286_v63, %v366_v56  ;;  %v1288_v3 = vpop.f32.mrb[21].mxu1  ;;  %v353_v63 = vld [vmem:[#allocation2 + $0x118] sm:$0xff] }
 0x153   : > { %1551 = vst [vmem:[%s2546_s17 + $0x178] sm:$0xff] %v1236_v61  ;;  %v1240_v4 = vadd.f32 %v1239_v1, %v384_v59  ;;  %v1289_v5 = vadd.f32 %v1288_v3, %v367_v60  ;;  %v1290_v6 = vpop.f32.mrb[22].mxu1  ;;  %v334_v60 = vld [vmem:[#allocation2 + $0x80] sm:$0xff]  ;;  %v335_v61 = vld [vmem:[#allocation2 + $0x88] sm:$0xff]  ;;  %v336_v1 = vld [vmem:[#allocation2 + $0x90] sm:$0xff] }
 0x154   : > { %1569 = vst [vmem:[%s2546_s17 + $0x208] sm:$0xff] %v1238_v0  ;;  %1552 = vst [vmem:[%s2546_s17 + $0x180] sm:$0xff] %v1287_v2  ;;  %v1291_v7 = vadd.f32 %v1290_v6, %v385_v28  ;;  %v1292_v8 = vpop.f32.mrb[23].mxu1  ;;  %v354_v2 = vld [vmem:[#allocation2 + $0x120] sm:$0xff] }
 0x155   : > { %1570 = vst [vmem:[%s2546_s17 + $0x210] sm:$0xff] %v1240_v4  ;;  %1553 = vst [vmem:[%s2546_s17 + $0x188] sm:$0xff] %v1289_v5  ;;  %v1293_v9 = vadd.f32 %v1292_v8, %v386_v40  ;;  %v374_v40 = vld [vmem:[#allocation2 + $0x1c0] sm:$0xff] }
 0x156   : > { %1571 = vst [vmem:[%s2546_s17 + $0x218] sm:$0xff] %v1291_v7 }
 0x157   : > { %1572 = vst [vmem:[%s2546_s17 + $0x220] sm:$0xff] %v1293_v9  ;;  %v393_v9 = vld [vmem:[#allocation2 + $0x258] sm:$0xff] }
 0x15f   : > { %v1329_v12 = vpop.f32.mrb[24].mxu0 }
 0x160   : > { %v1330_v15 = vadd.f32 %v1329_v12, %v330_v10  ;;  %v1331_v16 = vpop.f32.mrb[25].mxu0  ;;  %v355_v10 = vld [vmem:[#allocation2 + $0x128] sm:$0xff] }
 0x161   : > { %v1332_v19 = vadd.f32 %v1331_v16, %v331_v11  ;;  %v1333_v20 = vpop.f32.mrb[26].mxu0  ;;  %v1382_v21 = vpop.f32.mrb[24].mxu1 }
 0x162   : > { %1515 = vst [vmem:[%s2546_s17 + $0x60] sm:$0xff] %v1330_v15  ;;  %v1334_v23 = vadd.f32 %v1333_v20, %v349_v13  ;;  %v1335_v24 = vpop.f32.mrb[27].mxu0  ;;  %v1383_v25 = vadd.f32 %v1382_v21, %v332_v14  ;;  %v1384_v26 = vpop.f32.mrb[25].mxu1  ;;  %v391_v21 = vld [vmem:[#allocation2 + $0x248] sm:$0xff] }
 0x163   : > { %1516 = vst [vmem:[%s2546_s17 + $0x68] sm:$0xff] %v1332_v19  ;;  %v1336_v29 = vadd.f32 %v1335_v24, %v350_v17  ;;  %v1385_v30 = vadd.f32 %v1384_v26, %v333_v18  ;;  %v1386_v31 = vpop.f32.mrb[26].mxu1  ;;  %v372_v18 = vld [vmem:[#allocation2 + $0x1b0] sm:$0xff]  ;;  %v373_v19 = vld [vmem:[#allocation2 + $0x1b8] sm:$0xff] }
 0x164   : > { %1535 = vst [vmem:[%s2546_s17 + $0xf8] sm:$0xff] %v1334_v23  ;;  %1517 = vst [vmem:[%s2546_s17 + $0x70] sm:$0xff] %v1383_v25  ;;  %v1387_v32 = vadd.f32 %v1386_v31, %v351_v22  ;;  %v1388_v33 = vpop.f32.mrb[27].mxu1  ;;  %v392_v24 = vld [vmem:[#allocation2 + $0x250] sm:$0xff] }
 0x165   : > { %1536 = vst [vmem:[%s2546_s17 + $0x100] sm:$0xff] %v1336_v29  ;;  %1518 = vst [vmem:[%s2546_s17 + $0x78] sm:$0xff] %v1385_v30  ;;  %v1389_v34 = vadd.f32 %v1388_v33, %v352_v27 }
 0x166   : > { %1537 = vst [vmem:[%s2546_s17 + $0x108] sm:$0xff] %v1387_v32 }
 0x167   : > { %1538 = vst [vmem:[%s2546_s17 + $0x110] sm:$0xff] %v1389_v34  ;;  %v1339_v37 = vpop.f32.mrb[28].mxu0 }
 0x168   : > { %v1340_v41 = vadd.f32 %v1339_v37, %v368_v35  ;;  %v1341_v42 = vpop.f32.mrb[29].mxu0 }
 0x169   : > { %v1342_v45 = vadd.f32 %v1341_v42, %v369_v36  ;;  %v1343_v46 = vpop.f32.mrb[30].mxu0  ;;  %v1392_v47 = vpop.f32.mrb[28].mxu1 }
 0x16a   : > { %1554 = vst [vmem:[%s2546_s17 + $0x190] sm:$0xff] %v1340_v41  ;;  %v1344_v49 = vadd.f32 %v1343_v46, %v387_v38  ;;  %v1345_v50 = vpop.f32.mrb[31].mxu0  ;;  %v1393_v51 = vadd.f32 %v1392_v47, %v370_v39  ;;  %v1394_v52 = vpop.f32.mrb[29].mxu1 }
 0x16b   : > { %1555 = vst [vmem:[%s2546_s17 + $0x198] sm:$0xff] %v1342_v45  ;;  %v1346_v54 = vadd.f32 %v1345_v50, %v388_v43  ;;  %v1395_v55 = vadd.f32 %v1394_v52, %v371_v44  ;;  %v1396_v56 = vpop.f32.mrb[30].mxu1 }
 0x16c   : > { %1573 = vst [vmem:[%s2546_s17 + $0x228] sm:$0xff] %v1344_v49  ;;  %1556 = vst [vmem:[%s2546_s17 + $0x1a0] sm:$0xff] %v1393_v51  ;;  %v1397_v57 = vadd.f32 %v1396_v56, %v389_v48  ;;  %v1398_v58 = vpop.f32.mrb[31].mxu1 }
 0x16d   : > { %1574 = vst [vmem:[%s2546_s17 + $0x230] sm:$0xff] %v1346_v54  ;;  %1557 = vst [vmem:[%s2546_s17 + $0x1a8] sm:$0xff] %v1395_v55  ;;  %v1399_v59 = vadd.f32 %v1398_v58, %v390_v53 }
 0x16e   : > { %1575 = vst [vmem:[%s2546_s17 + $0x238] sm:$0xff] %v1397_v57 }
 0x16f   : > { %1576 = vst [vmem:[%s2546_s17 + $0x240] sm:$0xff] %v1399_v59 }
 0x177   : > { %v1435_v62 = vpop.f32.mrb[32].mxu0 }
 0x178   : > { %v1436_v28 = vadd.f32 %v1435_v62, %v334_v60  ;;  %v1437_v0 = vpop.f32.mrb[33].mxu0 }
 0x179   : > { %v1438_v3 = vadd.f32 %v1437_v0, %v335_v61  ;;  %v1819_v4 = vpop.f32.mrb[32].mxu1  ;;  %v1439_v5 = vpop.f32.mrb[34].mxu0 }
 0x17a   : > { %1519 = vst [vmem:[%s2546_s17 + $0x80] sm:$0xff] %v1436_v28  ;;  %v1440_v6 = vadd.f32 %v1439_v5, %v353_v63  ;;  %v1488_v7 = vpop.f32.mrb[33].mxu1  ;;  %v1441_v8 = vpop.f32.mrb[35].mxu0  ;;  %v1497_v14 = vadd.f32 %v1819_v4, %v374_v40 }
 0x17b   : > { %1520 = vst [vmem:[%s2546_s17 + $0x88] sm:$0xff] %v1438_v3  ;;  %v1489_v11 = vadd.f32 %v1488_v7, %v336_v1  ;;  %v1442_v12 = vadd.f32 %v1441_v8, %v354_v2  ;;  %v1820_v13 = vpop.f32.mrb[34].mxu1 }
 0x17c   : > { %1539 = vst [vmem:[%s2546_s17 + $0x118] sm:$0xff] %v1440_v6  ;;  %v1491_v15 = vpop.f32.mrb[35].mxu1  ;;  %v1500_v16 = vadd.f32 %v1820_v13, %v393_v9  ;;  %1560 = vst.msk [vmem:[%s2546_s17 + $0x1c0] sm:$0xff] %vm1521_vm1, %v1497_v14 }
 0x17d   : > { %1522 = vst.msk [vmem:[%s2546_s17 + $0x90] sm:$0xff] %vm1521_vm1, %v1489_v11  ;;  %1540 = vst [vmem:[%s2546_s17 + $0x120] sm:$0xff] %v1442_v12  ;;  %v1492_v17 = vadd.f32 %v1491_v15, %v355_v10 }
 0x17e   : > { %1579 = vst.msk [vmem:[%s2546_s17 + $0x258] sm:$0xff] %vm1521_vm1, %v1500_v16 }
 0x17f   : > { %1541 = vst.msk [vmem:[%s2546_s17 + $0x128] sm:$0xff] %vm1521_vm1, %v1492_v17  ;;  %v1445_v20 = vpop.f32.mrb[36].mxu0 }
 0x180   : > { %v1446_v22 = vadd.f32 %v1445_v20, %v372_v18  ;;  %v1447_v23 = vpop.f32.mrb[37].mxu0 }
 0x181   : > { %v1448_v25 = vadd.f32 %v1447_v23, %v373_v19  ;;  %v1449_v26 = vpop.f32.mrb[38].mxu0 }
 0x182   : > { %1558 = vst [vmem:[%s2546_s17 + $0x1b0] sm:$0xff] %v1446_v22  ;;  %v1450_v27 = vadd.f32 %v1449_v26, %v391_v21  ;;  %v1451_v29 = vpop.f32.mrb[39].mxu0 }
 0x183   : > { %1559 = vst [vmem:[%s2546_s17 + $0x1b8] sm:$0xff] %v1448_v25  ;;  %v1452_v30 = vadd.f32 %v1451_v29, %v392_v24 }
 0x184   : > { %1577 = vst [vmem:[%s2546_s17 + $0x248] sm:$0xff] %v1450_v27 }
 0x185   : > { %1578 = vst [vmem:[%s2546_s17 + $0x250] sm:$0xff] %v1452_v30 }
 0x186 PF: > { %s14_s12 = sadd.s32 1, %s2050_s12  }
 0x187   : > { %p11_p3 = scmp.ge.s32.totalorder %s14_s12, 4  }
 0x189   :  { %13 = sbr.rel (!%p11_p3) target bundleno = 1 (0x1), region = 67 }
 0x190   :  { %1604 = vsyncpa [#allocation3], 1 }
 0x191   :  { %1606 = vsyncpa [#allocation3 + $0x1], 1 }

</bundles_post_ra>
